<compile_context>
chip_gen: v7x
topology: tpu7x:2x2x1
jax: 0.10.0
libtpu: 0.0.40
codegen_flags: <defaults>
</compile_context>

<pallas_src>
import functools

import jax
import jax.numpy as jnp
from jax.experimental import pallas as pl
from jax.experimental.pallas import tpu as pltpu

_NEG_INF = -1e30  # large-negative mask value (avoids -inf arithmetic)


def _round_up(x, m):
    return ((x + m - 1) // m) * m


def _fused_forward_kernel(x_ref, g_ref,
                          w1, b1, w2, b2, w3, b3, wh, bh,
                          out_ref, *, num_actions):
    """One batch tile: fused twin-MLP extractor + fused heads + Categorical.

    x_ref : [TB, F]   flattened observations (f32)
    g_ref : [TB, N]   Gumbel noise (zeros in eval mode)
    w1,b1 : [F, 2H]   column-concat of policy/value layer-1 (+ bias [1, 2H])
    w2,b2 : [2H, 4H]  block-diag of policy/value layer-2     (+ bias [1, 4H])
    w3,b3 : [4H, 4H]  block-diag of policy/value layer-3     (+ bias [1, 4H])
    wh,bh : [4H, N]   fused actor/critic head (N = 128-padded):
                      lanes [0, A) -> logits, lane A -> critic value
    out_ref: [TB, N]  packed: lane0 = value, lane1 = log_prob, lane2 = action
    """
    x = x_ref[...]

    # Fused extractor -> single [TB, 4H] latent = [latent_pi | latent_vf].
    # NOTE: the PyTorch MLP ends with a ReLU, so the final latent IS activated.
    h = jnp.maximum(jnp.dot(x, w1[...], preferred_element_type=jnp.float32) + b1[...], 0.0)
    h = jnp.maximum(jnp.dot(h, w2[...], preferred_element_type=jnp.float32) + b2[...], 0.0)
    h = jnp.maximum(jnp.dot(h, w3[...], preferred_element_type=jnp.float32) + b3[...], 0.0)

    # Fused heads: one matmul produces logits (lanes 0:A) and value (lane A).
    head = jnp.dot(h, wh[...], preferred_element_type=jnp.float32) + bh[...]
    tb, n = head.shape

    col = jax.lax.broadcasted_iota(jnp.int32, (tb, n), 1)
    values = head[:, num_actions:num_actions + 1]              # [TB, 1]
    logits = jnp.where(col < num_actions, head, _NEG_INF)      # mask padded lanes

    # Log-softmax (one max pass, reused downstream).
    m = jnp.max(logits, axis=-1, keepdims=True)
    z = logits - m
    lse = jnp.log(jnp.sum(jnp.exp(z), axis=-1, keepdims=True))
    log_probs = z - lse                                        # [TB, N]

    # Gumbel-max sampling (train) / plain argmax (eval: gumbel == 0).
    scores = log_probs + g_ref[...]
    smax = jnp.max(scores, axis=-1, keepdims=True)
    is_max = scores >= smax
    # First-max index (ties broken toward the lowest index, like the original)
    action = jnp.min(jnp.where(is_max, col, n), axis=-1, keepdims=True)
    # ... and the chosen action's log-prob gathered from the same is_max mask.
    logp = jnp.max(jnp.where(is_max, log_probs, _NEG_INF), axis=-1, keepdims=True)

    # Lane-dense packed output: one unmasked [TB, 128] store.
    out_ref[...] = (jnp.where(col == 0, values, 0.0) +
                    jnp.where(col == 1, logp, 0.0) +
                    jnp.where(col == 2, action.astype(jnp.float32), 0.0))


def init_params(key, input_dim, hidden_dim, output_dim):
    """Deterministic synthetic parameters (PyTorch-Linear-style uniform init).

    Weights are stored [in, out]; biases [1, out].
    Order: policy MLP (6), value MLP (6), actor head (2), critic head (2).
    """
    dims_mlp = [(input_dim, hidden_dim),
                (hidden_dim, hidden_dim * 2),
                (hidden_dim * 2, hidden_dim * 2)]

    def linear(k, fan_in, fan_out):
        kw, kb = jax.random.split(k)
        bound = 1.0 / jnp.sqrt(jnp.float32(fan_in))
        w = jax.random.uniform(kw, (fan_in, fan_out), jnp.float32, -bound, bound)
        b = jax.random.uniform(kb, (1, fan_out), jnp.float32, -bound, bound)
        return w, b

    keys = jax.random.split(key, 8)
    params = []
    for i, (fi, fo) in enumerate(dims_mlp):          # policy MLP
        params.extend(linear(keys[i], fi, fo))
    for i, (fi, fo) in enumerate(dims_mlp):          # value MLP
        params.extend(linear(keys[3 + i], fi, fo))
    params.extend(linear(keys[6], hidden_dim * 2, output_dim))   # actor head
    params.extend(linear(keys[7], hidden_dim * 2, 1))            # critic head
    return params


def fuse_params(params, num_actions):
    """Build the fused / block-diagonal weights consumed by the kernel."""
    (pw1, pb1, pw2, pb2, pw3, pb3,
     vw1, vb1, vw2, vb2, vw3, vb3, aw, ab, cw, cb) = params

    def block_diag(a, b):
        ra, ca = a.shape
        rb, cb_ = b.shape
        out = jnp.zeros((ra + rb, ca + cb_), jnp.float32)
        out = out.at[:ra, :ca].set(a)
        out = out.at[ra:, ca:].set(b)
        return out

    w1 = jnp.concatenate([pw1, vw1], axis=1)     # [F, 2H]
    b1 = jnp.concatenate([pb1, vb1], axis=1)     # [1, 2H]
    w2 = block_diag(pw2, vw2)                    # [2H, 4H]
    b2 = jnp.concatenate([pb2, vb2], axis=1)     # [1, 4H]
    w3 = block_diag(pw3, vw3)                    # [4H, 4H]
    b3 = jnp.concatenate([pb3, vb3], axis=1)     # [1, 4H]

    two_h = pw3.shape[1]                         # 2 * hidden_dim
    head_n = max(128, _round_up(num_actions + 1, 128))
    wh = jnp.zeros((2 * two_h, head_n), jnp.float32)
    wh = wh.at[:two_h, :num_actions].set(aw)                 # actor  <- latent_pi
    wh = wh.at[two_h:, num_actions].set(cw[:, 0])            # critic <- latent_vf
    bh = jnp.zeros((1, head_n), jnp.float32)
    bh = bh.at[0, :num_actions].set(ab[0])
    bh = bh.at[0, num_actions].set(cb[0, 0])
    return (w1, b1, w2, b2, w3, b3, wh, bh), head_n


def actor_critic_forward(params, state, *, mode="train", key=None):
    """Matches ActorCritic.forward: returns (actions [B], values [B,1], log_prob [B])."""
    B = state.shape[0]
    x = state.astype(jnp.float32).reshape(B, -1)       # torch.flatten(start_dim=1)
    F = x.shape[1]
    num_actions = params[12].shape[1]                  # actor weight [2H, A]

    fused, head_n = fuse_params(params, num_actions)

    # Batch tiling: TB multiple of 8, capped at 512 (fits v7x's 64 MiB VMEM with
    # resident fused weights and double-buffered x / gumbel / output tiles).
    TB = min(512, _round_up(B, 8))
    B_pad = _round_up(B, TB)
    if B_pad != B:
        x = jnp.pad(x, ((0, B_pad - B), (0, 0)))

    if mode == "train":
        if key is None:
            # Callers should pass a fresh key per rollout step so samples vary.
            key = jax.random.PRNGKey(0)
        gumbel = jax.random.gumbel(key, (B_pad, head_n), jnp.float32)
    else:
        gumbel = jnp.zeros((B_pad, head_n), jnp.float32)

    kernel = functools.partial(_fused_forward_kernel, num_actions=num_actions)

    grid = (B_pad // TB,)
    in_specs = ([pl.BlockSpec((TB, F), lambda i: (i, 0)),
                 pl.BlockSpec((TB, head_n), lambda i: (i, 0))] +
                [pl.BlockSpec(p.shape, lambda i: (0, 0)) for p in fused])
    out_specs = pl.BlockSpec((TB, head_n), lambda i: (i, 0))

    packed = pl.pallas_call(
        kernel,
        grid=grid,
        in_specs=in_specs,
        out_specs=out_specs,
        out_shape=jax.ShapeDtypeStruct((B_pad, head_n), jnp.float32),
        compiler_params=pltpu.CompilerParams(
            dimension_semantics=("parallel",)),   # shards batch tiles on v7x's 2 TCs
    )(x, gumbel, *fused)

    packed = packed[:B]
    values = packed[:, 0:1]                      # [B, 1]  (critic output, like torch)
    log_prob = packed[:, 1]                      # [B]
    actions = packed[:, 2].astype(jnp.int32)     # [B]     (Discrete action_space)
    return actions, values, log_prob


def _reference(params, state):
    """Pure-JAX reference of the deterministic parts of ActorCritic.forward."""
    (pw1, pb1, pw2, pb2, pw3, pb3,
     vw1, vb1, vw2, vb2, vw3, vb3, aw, ab, cw, cb) = params
    x = state.astype(jnp.float32).reshape(state.shape[0], -1)

    def mlp(w1, b1, w2, b2, w3, b3):
        h = jax.nn.relu(x @ w1 + b1)
        h = jax.nn.relu(h @ w2 + b2)
        return jax.nn.relu(h @ w3 + b3)

    latent_pi = mlp(pw1, pb1, pw2, pb2, pw3, pb3)
    latent_vf = mlp(vw1, vb1, vw2, vb2, vw3, vb3)
    values = latent_vf @ cw + cb
    logits = latent_pi @ aw + ab
    log_probs = jax.nn.log_softmax(logits, axis=-1)
    return values, logits, log_probs


if __name__ == "__main__":
    # Small config consistent with the module: flattened input_dim = 8,
    # hidden_dim = 32 (latent size = 64), 4 discrete actions, batch of 8 envs.
    B, OBS_SHAPE = 8, (2, 4)
    HIDDEN, N_ACTIONS = 32, 4

    key = jax.random.PRNGKey(0)
    k_params, k_obs, k_sample = jax.random.split(key, 3)
    params = init_params(k_params, OBS_SHAPE[0] * OBS_SHAPE[1], HIDDEN, N_ACTIONS)
    state = jax.random.normal(k_obs, (B, *OBS_SHAPE), jnp.float32)

    # train mode: Categorical sample via Gumbel-max (jax.random noise)
    actions_tr, values_tr, logp_tr = actor_critic_forward(
        params, state, mode="train", key=k_sample)
    # eval mode: softmax + argmax
    actions_ev, values_ev, logp_ev = actor_critic_forward(
        params, state, mode="eval")

    jax.block_until_ready((actions_tr, values_tr, logp_tr,
                           actions_ev, values_ev, logp_ev))

    # Correctness checks against a pure-JAX reference.
    ref_values, ref_logits, ref_logp = _reference(params, state)
    rows = jnp.arange(B)

    assert actions_tr.shape == (B,) and actions_ev.shape == (B,)
    assert values_tr.shape == (B, 1) and logp_tr.shape == (B,)
    assert bool(jnp.all((actions_tr >= 0) & (actions_tr < N_ACTIONS)))
    assert bool(jnp.all((actions_ev >= 0) & (actions_ev < N_ACTIONS)))
    assert jnp.allclose(values_tr, ref_values, atol=1e-4, rtol=1e-4)
    assert jnp.allclose(values_ev, ref_values, atol=1e-4, rtol=1e-4)
    # log_prob of whichever action was chosen must match the reference gather.
    assert jnp.allclose(logp_tr, ref_logp[rows, actions_tr], atol=1e-4, rtol=1e-4)
    assert jnp.allclose(logp_ev, ref_logp[rows, actions_ev], atol=1e-4, rtol=1e-4)
    # eval action == argmax(logits) wherever the top-2 gap is numerically safe.
    srt = jnp.sort(ref_logits, axis=-1)
    safe = (srt[:, -1] - srt[:, -2]) > 1e-4
    assert bool(jnp.all(jnp.where(safe, actions_ev == jnp.argmax(ref_logits, axis=-1), True)))

    print("KERNEL_OK")
</pallas_src>

<mosaic_0001>
module attributes {stable_mosaic.version = 11 : i64} {
  func.func @_fused_forward_kernel(%arg0: i32, %arg1: memref<8x8xf32, #tpu.memory_space<vmem>>, %arg2: memref<8x128xf32, #tpu.memory_space<vmem>>, %arg3: memref<8x64xf32, #tpu.memory_space<vmem>>, %arg4: memref<1x64xf32, #tpu.memory_space<vmem>>, %arg5: memref<64x128xf32, #tpu.memory_space<vmem>>, %arg6: memref<1x128xf32, #tpu.memory_space<vmem>>, %arg7: memref<128x128xf32, #tpu.memory_space<vmem>>, %arg8: memref<1x128xf32, #tpu.memory_space<vmem>>, %arg9: memref<128x128xf32, #tpu.memory_space<vmem>>, %arg10: memref<1x128xf32, #tpu.memory_space<vmem>>, %arg11: memref<8x128xf32, #tpu.memory_space<vmem>>) attributes {dimension_semantics = [#tpu.dimension_semantics<parallel>], iteration_bounds = array<i64: 1>, scalar_prefetch = 0 : i64, scratch_operands = 0 : i64, tpu.core_type = #tpu.core_type<tc>, window_params = [{transform_indices = @transform_0, window_bounds = array<i64: 8, 8>}, {transform_indices = @transform_1, window_bounds = array<i64: 8, 128>}, {pipeline_mode = #tpu.pipeline_mode<synchronous>, transform_indices = @transform_2, window_bounds = array<i64: 8, 64>}, {pipeline_mode = #tpu.pipeline_mode<synchronous>, transform_indices = @transform_3, window_bounds = array<i64: 1, 64>}, {pipeline_mode = #tpu.pipeline_mode<synchronous>, transform_indices = @transform_4, window_bounds = array<i64: 64, 128>}, {pipeline_mode = #tpu.pipeline_mode<synchronous>, transform_indices = @transform_5, window_bounds = array<i64: 1, 128>}, {pipeline_mode = #tpu.pipeline_mode<synchronous>, transform_indices = @transform_6, window_bounds = array<i64: 128, 128>}, {pipeline_mode = #tpu.pipeline_mode<synchronous>, transform_indices = @transform_7, window_bounds = array<i64: 1, 128>}, {pipeline_mode = #tpu.pipeline_mode<synchronous>, transform_indices = @transform_8, window_bounds = array<i64: 128, 128>}, {pipeline_mode = #tpu.pipeline_mode<synchronous>, transform_indices = @transform_9, window_bounds = array<i64: 1, 128>}, {transform_indices = @transform_10, window_bounds = array<i64: 8, 128>}]} {
    %c0 = arith.constant 0 : index
    %c0_0 = arith.constant 0 : index
    %0 = vector.load %arg1[%c0, %c0_0] : memref<8x8xf32, #tpu.memory_space<vmem>>, vector<8x8xf32>
    %c0_1 = arith.constant 0 : index
    %c0_2 = arith.constant 0 : index
    %1 = vector.load %arg3[%c0_1, %c0_2] : memref<8x64xf32, #tpu.memory_space<vmem>>, vector<8x64xf32>
    %cst = arith.constant dense<0.000000e+00> : vector<8x64xf32>
    %2 = tpu.matmul %0, %1, %cst {dimension_numbers = #tpu.dot_dimension_numbers<[1], [0], [0], [1], [0, 0, 1, 1], [], []>} : vector<8x8xf32>, vector<8x64xf32>, vector<8x64xf32> -> vector<8x64xf32>
    %c0_3 = arith.constant 0 : index
    %c0_4 = arith.constant 0 : index
    %3 = vector.load %arg4[%c0_3, %c0_4] : memref<1x64xf32, #tpu.memory_space<vmem>>, vector<1x64xf32>
    %4 = vector.broadcast %3 : vector<1x64xf32> to vector<8x64xf32>
    %5 = arith.addf %2, %4 : vector<8x64xf32>
    %cst_5 = arith.constant 0.000000e+00 : f32
    %6 = vector.broadcast %cst_5 : f32 to vector<8x64xf32>
    %7 = arith.maximumf %5, %6 : vector<8x64xf32>
    %c0_6 = arith.constant 0 : index
    %c0_7 = arith.constant 0 : index
    %8 = vector.load %arg5[%c0_6, %c0_7] : memref<64x128xf32, #tpu.memory_space<vmem>>, vector<64x128xf32>
    %cst_8 = arith.constant dense<0.000000e+00> : vector<8x128xf32>
    %9 = tpu.matmul %7, %8, %cst_8 {dimension_numbers = #tpu.dot_dimension_numbers<[1], [0], [0], [1], [0, 0, 1, 1], [], []>} : vector<8x64xf32>, vector<64x128xf32>, vector<8x128xf32> -> vector<8x128xf32>
    %c0_9 = arith.constant 0 : index
    %c0_10 = arith.constant 0 : index
    %10 = vector.load %arg6[%c0_9, %c0_10] : memref<1x128xf32, #tpu.memory_space<vmem>>, vector<1x128xf32>
    %11 = vector.broadcast %10 : vector<1x128xf32> to vector<8x128xf32>
    %12 = arith.addf %9, %11 : vector<8x128xf32>
    %cst_11 = arith.constant 0.000000e+00 : f32
    %13 = vector.broadcast %cst_11 : f32 to vector<8x128xf32>
    %14 = arith.maximumf %12, %13 : vector<8x128xf32>
    %c0_12 = arith.constant 0 : index
    %c0_13 = arith.constant 0 : index
    %15 = vector.load %arg7[%c0_12, %c0_13] : memref<128x128xf32, #tpu.memory_space<vmem>>, vector<128x128xf32>
    %cst_14 = arith.constant dense<0.000000e+00> : vector<8x128xf32>
    %16 = tpu.matmul %14, %15, %cst_14 {dimension_numbers = #tpu.dot_dimension_numbers<[1], [0], [0], [1], [0, 0, 1, 1], [], []>} : vector<8x128xf32>, vector<128x128xf32>, vector<8x128xf32> -> vector<8x128xf32>
    %c0_15 = arith.constant 0 : index
    %c0_16 = arith.constant 0 : index
    %17 = vector.load %arg8[%c0_15, %c0_16] : memref<1x128xf32, #tpu.memory_space<vmem>>, vector<1x128xf32>
    %18 = vector.broadcast %17 : vector<1x128xf32> to vector<8x128xf32>
    %19 = arith.addf %16, %18 : vector<8x128xf32>
    %cst_17 = arith.constant 0.000000e+00 : f32
    %20 = vector.broadcast %cst_17 : f32 to vector<8x128xf32>
    %21 = arith.maximumf %19, %20 : vector<8x128xf32>
    %c0_18 = arith.constant 0 : index
    %c0_19 = arith.constant 0 : index
    %22 = vector.load %arg9[%c0_18, %c0_19] : memref<128x128xf32, #tpu.memory_space<vmem>>, vector<128x128xf32>
    %cst_20 = arith.constant dense<0.000000e+00> : vector<8x128xf32>
    %23 = tpu.matmul %21, %22, %cst_20 {dimension_numbers = #tpu.dot_dimension_numbers<[1], [0], [0], [1], [0, 0, 1, 1], [], []>} : vector<8x128xf32>, vector<128x128xf32>, vector<8x128xf32> -> vector<8x128xf32>
    %c0_21 = arith.constant 0 : index
    %c0_22 = arith.constant 0 : index
    %24 = vector.load %arg10[%c0_21, %c0_22] : memref<1x128xf32, #tpu.memory_space<vmem>>, vector<1x128xf32>
    %25 = vector.broadcast %24 : vector<1x128xf32> to vector<8x128xf32>
    %26 = arith.addf %23, %25 : vector<8x128xf32>
    %27 = tpu.iota {dimensions = array<i32: 1>} : vector<8x128xi32>
    %28 = vector.extract_strided_slice %26 {offsets = [0, 4], sizes = [8, 1], strides = [1, 1]} : vector<8x128xf32> to vector<8x1xf32>
    %c4_i32 = arith.constant 4 : i32
    %29 = vector.broadcast %c4_i32 : i32 to vector<8x128xi32>
    %30 = arith.cmpi slt, %27, %29 : vector<8x128xi32>
    %cst_23 = arith.constant -1.000000e+30 : f32
    %31 = vector.broadcast %cst_23 : f32 to vector<8x128xf32>
    %32 = arith.select %30, %26, %31 : vector<8x128xi1>, vector<8x128xf32>
    %cst_24 = arith.constant dense<0xFF800000> : vector<8xf32>
    %33 = vector.multi_reduction <maximumf>, %32, %cst_24 [1] : vector<8x128xf32> to vector<8xf32>
    %34 = vector.shape_cast %33 : vector<8xf32> to vector<8x1xf32>
    %35 = vector.broadcast %34 : vector<8x1xf32> to vector<8x128xf32>
    %36 = arith.subf %32, %35 : vector<8x128xf32>
    %37 = math.exp %36 : vector<8x128xf32>
    %cst_25 = arith.constant dense<0.000000e+00> : vector<8xf32>
    %38 = vector.multi_reduction <add>, %37, %cst_25 [1] : vector<8x128xf32> to vector<8xf32>
    %39 = vector.shape_cast %38 : vector<8xf32> to vector<8x1xf32>
    %40 = math.log %39 : vector<8x1xf32>
    %41 = vector.broadcast %40 : vector<8x1xf32> to vector<8x128xf32>
    %42 = arith.subf %36, %41 : vector<8x128xf32>
    %c0_26 = arith.constant 0 : index
    %c0_27 = arith.constant 0 : index
    %43 = vector.load %arg2[%c0_26, %c0_27] : memref<8x128xf32, #tpu.memory_space<vmem>>, vector<8x128xf32>
    %44 = arith.addf %42, %43 : vector<8x128xf32>
    %cst_28 = arith.constant dense<0xFF800000> : vector<8xf32>
    %45 = vector.multi_reduction <maximumf>, %44, %cst_28 [1] : vector<8x128xf32> to vector<8xf32>
    %46 = vector.shape_cast %45 : vector<8xf32> to vector<8x1xf32>
    %47 = vector.broadcast %46 : vector<8x1xf32> to vector<8x128xf32>
    %48 = arith.cmpf oge, %44, %47 : vector<8x128xf32>
    %c128_i32 = arith.constant 128 : i32
    %49 = vector.broadcast %c128_i32 : i32 to vector<8x128xi32>
    %50 = arith.select %48, %27, %49 : vector<8x128xi1>, vector<8x128xi32>
    %cst_29 = arith.constant dense<2147483647> : vector<8xi32>
    %51 = vector.multi_reduction <minsi>, %50, %cst_29 [1] : vector<8x128xi32> to vector<8xi32>
    %52 = vector.shape_cast %51 : vector<8xi32> to vector<8x1xi32>
    %cst_30 = arith.constant -1.000000e+30 : f32
    %53 = vector.broadcast %cst_30 : f32 to vector<8x128xf32>
    %54 = arith.select %48, %42, %53 : vector<8x128xi1>, vector<8x128xf32>
    %cst_31 = arith.constant dense<0xFF800000> : vector<8xf32>
    %55 = vector.multi_reduction <maximumf>, %54, %cst_31 [1] : vector<8x128xf32> to vector<8xf32>
    %56 = vector.shape_cast %55 : vector<8xf32> to vector<8x1xf32>
    %c0_i32 = arith.constant 0 : i32
    %57 = vector.broadcast %c0_i32 : i32 to vector<8x128xi32>
    %58 = arith.cmpi eq, %27, %57 : vector<8x128xi32>
    %cst_32 = arith.constant 0.000000e+00 : f32
    %59 = vector.shape_cast %28 : vector<8x1xf32> to vector<8x1xf32>
    %60 = vector.broadcast %59 : vector<8x1xf32> to vector<8x128xf32>
    %61 = vector.broadcast %cst_32 : f32 to vector<8x128xf32>
    %62 = arith.select %58, %60, %61 : vector<8x128xi1>, vector<8x128xf32>
    %c1_i32 = arith.constant 1 : i32
    %63 = vector.broadcast %c1_i32 : i32 to vector<8x128xi32>
    %64 = arith.cmpi eq, %27, %63 : vector<8x128xi32>
    %cst_33 = arith.constant 0.000000e+00 : f32
    %65 = vector.shape_cast %56 : vector<8x1xf32> to vector<8x1xf32>
    %66 = vector.broadcast %65 : vector<8x1xf32> to vector<8x128xf32>
    %67 = vector.broadcast %cst_33 : f32 to vector<8x128xf32>
    %68 = arith.select %64, %66, %67 : vector<8x128xi1>, vector<8x128xf32>
    %69 = arith.addf %62, %68 : vector<8x128xf32>
    %c2_i32 = arith.constant 2 : i32
    %70 = vector.broadcast %c2_i32 : i32 to vector<8x128xi32>
    %71 = arith.cmpi eq, %27, %70 : vector<8x128xi32>
    %72 = arith.sitofp %52 : vector<8x1xi32> to vector<8x1xf32>
    %cst_34 = arith.constant 0.000000e+00 : f32
    %73 = vector.shape_cast %72 : vector<8x1xf32> to vector<8x1xf32>
    %74 = vector.broadcast %73 : vector<8x1xf32> to vector<8x128xf32>
    %75 = vector.broadcast %cst_34 : f32 to vector<8x128xf32>
    %76 = arith.select %71, %74, %75 : vector<8x128xi1>, vector<8x128xf32>
    %77 = arith.addf %69, %76 : vector<8x128xf32>
    %c0_35 = arith.constant 0 : index
    %c0_36 = arith.constant 0 : index
    %78 = vector.load %arg11[%c0_35, %c0_36] : memref<8x128xf32, #tpu.memory_space<vmem>>, vector<8x128xf32>
    tpu.vector_store %arg11[%c0_35, %c0_36], %77 {strides = array<i32>} : memref<8x128xf32, #tpu.memory_space<vmem>>, vector<8x128xf32>,
    return
  }
  func.func @transform_0(%arg0: i32) -> (i32, i32) {
    %c0_i32 = arith.constant 0 : i32
    %c0_i32_0 = arith.constant 0 : i32
    return %arg0, %c0_i32 : i32, i32
  }
  func.func @transform_1(%arg0: i32) -> (i32, i32) {
    %c0_i32 = arith.constant 0 : i32
    %c0_i32_0 = arith.constant 0 : i32
    return %arg0, %c0_i32 : i32, i32
  }
  func.func @transform_2(%arg0: i32) -> (i32, i32) {
    %c0_i32 = arith.constant 0 : i32
    %c0_i32_0 = arith.constant 0 : i32
    %c0_i32_1 = arith.constant 0 : i32
    return %c0_i32, %c0_i32_0 : i32, i32
  }
  func.func @transform_3(%arg0: i32) -> (i32, i32) {
    %c0_i32 = arith.constant 0 : i32
    %c0_i32_0 = arith.constant 0 : i32
    %c0_i32_1 = arith.constant 0 : i32
    return %c0_i32, %c0_i32_0 : i32, i32
  }
  func.func @transform_4(%arg0: i32) -> (i32, i32) {
    %c0_i32 = arith.constant 0 : i32
    %c0_i32_0 = arith.constant 0 : i32
    %c0_i32_1 = arith.constant 0 : i32
    return %c0_i32, %c0_i32_0 : i32, i32
  }
  func.func @transform_5(%arg0: i32) -> (i32, i32) {
    %c0_i32 = arith.constant 0 : i32
    %c0_i32_0 = arith.constant 0 : i32
    %c0_i32_1 = arith.constant 0 : i32
    return %c0_i32, %c0_i32_0 : i32, i32
  }
  func.func @transform_6(%arg0: i32) -> (i32, i32) {
    %c0_i32 = arith.constant 0 : i32
    %c0_i32_0 = arith.constant 0 : i32
    %c0_i32_1 = arith.constant 0 : i32
    return %c0_i32, %c0_i32_0 : i32, i32
  }
  func.func @transform_7(%arg0: i32) -> (i32, i32) {
    %c0_i32 = arith.constant 0 : i32
    %c0_i32_0 = arith.constant 0 : i32
    %c0_i32_1 = arith.constant 0 : i32
    return %c0_i32, %c0_i32_0 : i32, i32
  }
  func.func @transform_8(%arg0: i32) -> (i32, i32) {
    %c0_i32 = arith.constant 0 : i32
    %c0_i32_0 = arith.constant 0 : i32
    %c0_i32_1 = arith.constant 0 : i32
    return %c0_i32, %c0_i32_0 : i32, i32
  }
  func.func @transform_9(%arg0: i32) -> (i32, i32) {
    %c0_i32 = arith.constant 0 : i32
    %c0_i32_0 = arith.constant 0 : i32
    %c0_i32_1 = arith.constant 0 : i32
    return %c0_i32, %c0_i32_0 : i32, i32
  }
  func.func @transform_10(%arg0: i32) -> (i32, i32) {
    %c0_i32 = arith.constant 0 : i32
    %c0_i32_0 = arith.constant 0 : i32
    return %arg0, %c0_i32 : i32, i32
  }
}

</mosaic_0001>

<bundles_post_ra>
// kernel: tpu_custom_call.1
= control target key start
LH: loop header
LB: loop body
LE: loop exit
PB: predicated region body
PF: predicated region fallthrough
CT: control target
= control target key end

     0   :  { %15 = vsyncpa [#allocation3], 0  ;;  %s1146_s0 = inlined_call_operand.hbm [shape: f32[8,8], index: 0, kind: input, shape index: {}]   ;;  %s1147_s1 = inlined_call_operand.hbm [shape: f32[8,128], index: 1, kind: input, shape index: {}]   ;;  %s1148_s2 = inlined_call_operand.hbm [shape: f32[8,64], index: 2, kind: input, shape index: {}]   ;;  %s1149_s3 = inlined_call_operand.vmem [shape: f32[1,64], index: 3, kind: input, shape index: {}]   ;;  %s1150_s4 = inlined_call_operand.hbm [shape: f32[64,128], index: 4, kind: input, shape index: {}]   ;;  %s1151_s5 = inlined_call_operand.vmem [shape: f32[1,128], index: 5, kind: input, shape index: {}]   ;;  %s1152_s6 = inlined_call_operand.hbm [shape: f32[128,128], index: 6, kind: input, shape index: {}]   ;;  %s1153_s7 = inlined_call_operand.vmem [shape: f32[1,128], index: 7, kind: input, shape index: {}]   ;;  %s1154_s8 = inlined_call_operand.hbm [shape: f32[128,128], index: 8, kind: input, shape index: {}]   ;;  %s1155_s9 = inlined_call_operand.vmem [shape: f32[1,128], index: 9, kind: input, shape index: {}]   ;;  %s1156_s10 = inlined_call_operand.hbm [shape: f32[8,128], index: 10, kind: output, shape index: {}]  }
   0x1   :  { %16 = vsyncpa [#allocation6], 0 }
   0x2   :  { %17 = vsyncpa [#allocation9], 0 }
   0x3   :  { %18 = vsyncpa [#allocation12], 0 }
   0x4   :  { %19 = vsyncpa [#allocation4], 0  ;;  %s930_s13 = smov [#allocation5]   ;;  %s931_s15 = smov [#allocation8]  }
   0x5   :  { %s36_s14 = sshll.u32 %s930_s13, 4  ;;  %s57_s16 = sshll.u32 %s931_s15, 4  ;;  %s37_s14 = int_to_ptr.vmem [resolvable:$true] %s36_s14  ;;  %s998_s16 = int_to_ptr.vmem [resolvable:$true] %s57_s16 }
   0x6   :  { %s766_s19 = scalar_lea.hbm %s1147_s1, 128 }
   0x7   :  { %p767_p0 = scmp.ne.s32.totalorder %s1147_s1, %s766_s19  ;;  %p770_p1 = scmp.lt.u32.totalorder %s766_s19, %s1147_s1 }
   0x9   :  { %p772_p2 = pnand %p770_p1, %p767_p0 }
   0xb   :  { %775 = shalt.err (!%p772_p2)
}
   0xc   :  { %s776_s24 = scalar_lea.vmem %s37_s14, 128  ;;  %p781_p4 = scmp.lt.s32.totalorder %s37_s14, %s37_s14 }
   0xd   :  { %p777_p3 = scmp.ne.s32.totalorder %s37_s14, %s776_s24  ;;  %p782_p5 = scmp.lt.s32.totalorder %s776_s24, %s776_s24 }
   0xf   :  { %p783_p6 = por %p782_p5, %p781_p4 }
  0x11   :  { %p784_p7 = pnand %p783_p6, %p777_p3 }
  0x13   :  { %787 = shalt.err (!%p784_p7)
}
  0x14   :  { %39 = dma.hbm_to_vmem [thread:$0]  %s1147_s1, 128, %s37_s14, [#allocation6]  }
  0x15   :  { %s788_s29 = scalar_lea.hbm %s1150_s4, 1024 }
  0x16   :  { %p789_p8 = scmp.ne.s32.totalorder %s1150_s4, %s788_s29  ;;  %p792_p9 = scmp.lt.u32.totalorder %s788_s29, %s1150_s4 }
  0x18   :  { %p794_p10 = pnand %p792_p9, %p789_p8 }
  0x1a   :  { %797 = shalt.err (!%p794_p10)
}
  0x1b   :  { %s798_s15 = scalar_lea.vmem %s998_s16, 1024  ;;  %p803_p12 = scmp.lt.s32.totalorder %s998_s16, %s998_s16 }
  0x1c   :  { %p799_p11 = scmp.ne.s32.totalorder %s998_s16, %s798_s15  ;;  %p804_p13 = scmp.lt.s32.totalorder %s798_s15, %s798_s15 }
  0x1e   :  { %p805_p0 = por %p804_p13, %p803_p12 }
  0x20   :  { %p806_p1 = pnand %p805_p0, %p799_p11 }
  0x22   :  { %809 = shalt.err (!%p806_p1)
}
  0x23   :  { %s932_s1 = smov 128   ;;  %s933_s14 = smov 8  }
  0x24   :  { %63 = dma.hbm_to_vmem [thread:$0]  %s1150_s4, 1024, %s998_s16, [#allocation9], %s932_s1, %s932_s1, %s933_s14  }
  0x25   :  { %s934_s19 = smov [#allocation2]   ;;  %s935_s21 = smov [#allocation7]  }
  0x26   :  { %s26_s20 = sshll.u32 %s934_s19, 4  ;;  %s46_s22 = sshll.u32 %s935_s21, 4  ;;  %s27_s20 = int_to_ptr.vmem [resolvable:$true] %s26_s20  ;;  %s47_s22 = int_to_ptr.vmem [resolvable:$true] %s46_s22 }
  0x27   :  { %s810_s25 = scalar_lea.hbm %s1146_s0, 128 }
  0x28   :  { %p811_p2 = scmp.ne.s32.totalorder %s1146_s0, %s810_s25  ;;  %p814_p3 = scmp.lt.u32.totalorder %s810_s25, %s1146_s0 }
  0x2a   :  { %p816_p4 = pnand %p814_p3, %p811_p2 }
  0x2c   :  { %819 = shalt.err (!%p816_p4)
}
  0x2d   :  { %s820_s4 = scalar_lea.vmem %s27_s20, 128  ;;  %p825_p6 = scmp.lt.s32.totalorder %s27_s20, %s27_s20 }
  0x2e   :  { %p821_p5 = scmp.ne.s32.totalorder %s27_s20, %s820_s4  ;;  %p826_p7 = scmp.lt.s32.totalorder %s820_s4, %s820_s4 }
  0x30   :  { %p827_p8 = por %p826_p7, %p825_p6 }
  0x32   :  { %p828_p9 = pnand %p827_p8, %p821_p5 }
  0x34   :  { %831 = shalt.err (!%p828_p9)
}
  0x35   :  { %29 = dma.hbm_to_vmem [thread:$0]  %s1146_s0, 128, %s27_s20, [#allocation3]  }
  0x36   :  { %s832_s13 = scalar_lea.hbm %s1148_s2, 128 }
  0x37   :  { %p833_p10 = scmp.ne.s32.totalorder %s1148_s2, %s832_s13  ;;  %p836_p11 = scmp.lt.u32.totalorder %s832_s13, %s1148_s2 }
  0x39   :  { %p838_p12 = pnand %p836_p11, %p833_p10 }
  0x3b   :  { %841 = shalt.err (!%p838_p12)
}
  0x3c   :  { %s842_s21 = scalar_lea.vmem %s47_s22, 128  ;;  %p847_p0 = scmp.lt.s32.totalorder %s47_s22, %s47_s22 }
  0x3d   :  { %p843_p13 = scmp.ne.s32.totalorder %s47_s22, %s842_s21  ;;  %p848_p1 = scmp.lt.s32.totalorder %s842_s21, %s842_s21 }
  0x3f   :  { %p849_p2 = por %p848_p1, %p847_p0 }
  0x41   :  { %p850_p3 = pnand %p849_p2, %p843_p13 }
  0x43   :  { %853 = shalt.err (!%p850_p3)
}
  0x44   :  { %49 = dma.hbm_to_vmem [thread:$0]  %s1148_s2, 128, %s47_s22, [#allocation6]  }
  0x45   :  { %s936_s23 = smov [#allocation10]   ;;  %s937_s25 = smov [#allocation11]  }
  0x46   :  { %s71_s24 = sshll.u32 %s936_s23, 4  ;;  %s85_s26 = sshll.u32 %s937_s25, 4  ;;  %s72_s24 = int_to_ptr.vmem [resolvable:$true] %s71_s24  ;;  %s1056_s26 = int_to_ptr.vmem [resolvable:$true] %s85_s26 }
  0x47   :  { %s854_s29 = scalar_lea.hbm %s1152_s6, 2048 }
  0x48   :  { %p855_p4 = scmp.ne.s32.totalorder %s1152_s6, %s854_s29  ;;  %p858_p5 = scmp.lt.u32.totalorder %s854_s29, %s1152_s6 }
  0x4a   :  { %p860_p6 = pnand %p858_p5, %p855_p4 }
  0x4c   :  { %863 = shalt.err (!%p860_p6)
}
  0x4d   :  { %s864_s2 = scalar_lea.vmem %s72_s24, 2048  ;;  %p869_p8 = scmp.lt.s32.totalorder %s72_s24, %s72_s24 }
  0x4e   :  { %p865_p7 = scmp.ne.s32.totalorder %s72_s24, %s864_s2  ;;  %p870_p9 = scmp.lt.s32.totalorder %s864_s2, %s864_s2 }
  0x50   :  { %p871_p10 = por %p870_p9, %p869_p8 }
  0x52   :  { %p872_p11 = pnand %p871_p10, %p865_p7 }
  0x54   :  { %875 = shalt.err (!%p872_p11)
}
  0x55   :  { %77 = dma.hbm_to_vmem [thread:$0]  %s1152_s6, 2048, %s72_s24, [#allocation9], %s932_s1, %s932_s1, %s933_s14  }
  0x56   :  { %s876_s17 = scalar_lea.hbm %s1154_s8, 2048 }
  0x57   :  { %p877_p12 = scmp.ne.s32.totalorder %s1154_s8, %s876_s17  ;;  %p880_p13 = scmp.lt.u32.totalorder %s876_s17, %s1154_s8 }
  0x59   :  { %p882_p0 = pnand %p880_p13, %p877_p12 }
  0x5b   :  { %885 = shalt.err (!%p882_p0)
}
  0x5c   :  { %s886_s20 = scalar_lea.vmem %s1056_s26, 2048  ;;  %p891_p2 = scmp.lt.s32.totalorder %s1056_s26, %s1056_s26 }
  0x5d   :  { %p887_p1 = scmp.ne.s32.totalorder %s1056_s26, %s886_s20  ;;  %p892_p3 = scmp.lt.s32.totalorder %s886_s20, %s886_s20 }
  0x5f   :  { %p893_p4 = por %p892_p3, %p891_p2 }
  0x61   :  { %p894_p5 = pnand %p893_p4, %p887_p1 }
  0x63   :  { %897 = shalt.err (!%p894_p5)
}
  0x64   :  { %91 = dma.hbm_to_vmem [thread:$0]  %s1154_s8, 2048, %s1056_s26, [#allocation12], %s932_s1, %s932_s1, %s933_s14  }
  0x65   :  { %920 = dma.done.wait [#allocation3], 128  }
  0x66   :  { %921 = vsyncadd [#allocation3], 4294967168 }
  0x67   :  { %922 = dma.done.wait [#allocation6], 256  }
  0x68   :  { %923 = vsyncadd [#allocation6], 4294967040 }
  0x69   :  { %924 = dma.done.wait [#allocation9], 3072  }
  0x6a   :  { %925 = vsyncadd [#allocation9], 4294964224 }
  0x6b   :  { %926 = dma.done.wait [#allocation12], 2048  }
  0x6c   :  { %927 = vsyncadd [#allocation12], 4294965248  ;;  %v938_v0 = vmov 0.0   ;;  %vm939_vm0 = vmmov 0   ;;  %v940_v1 = vmov 0.0|0.0   ;;  %vm121_vm1 = vcmask 64512  }
  0x6d   :  { %594 = vmatprep.subr.mxu0 %v938_v0  ;;  %596 = vmatprep.mubr.msk.f32.mxu0 %vm939_vm0, %v938_v0  ;;  %v113_v2 = vld [vmem:[#allocation7] sm:$0xff]  ;;  %v112_v3 = vld [vmem:[#allocation2] sm:$0xff]  ;;  %v196_v4 = vld [vmem:[#allocation8] sm:$0xff]  ;;  %vm211_vm2 = vcmask 523264  }
  0x6e   :  { %688 = vmatprep.subr.bf16.mxu1 %v940_v1  ;;  %615 = vmatprep.mubr.msk.f32.mxu1 %vm939_vm0, %v938_v0  ;;  %v197_v5 = vld [vmem:[#allocation8 + $0x8] sm:$0xff]  ;;  %v198_v6 = vld [vmem:[#allocation8 + $0x10] sm:$0xff]  ;;  %v199_v7 = vld [vmem:[#allocation8 + $0x18] sm:$0xff] }
  0x6f   :  { %595 = vmatpush3.msra.mxu0 %v113_v2  ;;  %v689_v8 = vpack.c.bf16 %v197_v5, %v196_v4  ;;  %v692_v9 = vpack.c.bf16 %v199_v7, %v198_v6  ;;  %v200_v10 = vld [vmem:[#allocation8 + $0x20] sm:$0xff]  ;;  %v201_v11 = vld [vmem:[#allocation8 + $0x28] sm:$0xff]  ;;  %v202_v13 = vld [vmem:[#allocation8 + $0x30] sm:$0xff] }
  0x70   :  { %597 = vmatmul.mubr.msk.f32.vlgmr.msra.gmra.mrb[0].mxu0 %vm121_vm1, %v112_v3  ;;  %700 = vmatprep.subr.bf16.mxu0 %v940_v1  ;;  %v695_v12 = vpack.c.bf16 %v201_v11, %v200_v10  ;;  %v203_v14 = vld [vmem:[#allocation8 + $0x38] sm:$0xff]  ;;  %v286_v16 = vld [vmem:[#allocation10] sm:$0xff]  ;;  %v287_v17 = vld [vmem:[#allocation10 + $0x8] sm:$0xff] }
  0x71   :  { %650 = vmatprep.mubr.msk.f32.mxu0 %vm939_vm0, %v938_v0  ;;  %690 = vmatpush3.bf16.msra.mxu1 %v689_v8  ;;  %v698_v15 = vpack.c.bf16 %v203_v14, %v202_v13  ;;  %v288_v18 = vld [vmem:[#allocation10 + $0x10] sm:$0xff]  ;;  %v701_v19 = vpack.c.bf16 %v287_v17, %v286_v16  ;;  %v289_v20 = vld [vmem:[#allocation10 + $0x18] sm:$0xff]  ;;  %v290_v22 = vld [vmem:[#allocation10 + $0x20] sm:$0xff] }
  0x72   :  { %691 = vmatprep.subr.bf16.mxu1 %v940_v1  ;;  %v704_v21 = vpack.c.bf16 %v289_v20, %v288_v18  ;;  %v291_v23 = vld [vmem:[#allocation10 + $0x28] sm:$0xff]  ;;  %v292_v25 = vld [vmem:[#allocation10 + $0x30] sm:$0xff]  ;;  %v293_v26 = vld [vmem:[#allocation10 + $0x38] sm:$0xff] }
  0x73   :  { %702 = vmatpush3.bf16.msra.mxu0 %v701_v19  ;;  %v707_v24 = vpack.c.bf16 %v291_v23, %v290_v22  ;;  %v710_v27 = vpack.c.bf16 %v293_v26, %v292_v25  ;;  %v294_v28 = vld [vmem:[#allocation10 + $0x40] sm:$0xff]  ;;  %v295_v29 = vld [vmem:[#allocation10 + $0x48] sm:$0xff]  ;;  %v296_v31 = vld [vmem:[#allocation10 + $0x50] sm:$0xff] }
  0x74   :  { %703 = vmatprep.subr.bf16.mxu0 %v940_v1  ;;  %v713_v30 = vpack.c.bf16 %v295_v29, %v294_v28  ;;  %v297_v32 = vld [vmem:[#allocation10 + $0x58] sm:$0xff]  ;;  %v298_v34 = vld [vmem:[#allocation10 + $0x60] sm:$0xff]  ;;  %v299_v35 = vld [vmem:[#allocation10 + $0x68] sm:$0xff] }
  0x75   :  { %693 = vmatpush3.bf16.msra.mxu1 %v692_v9  ;;  %v716_v33 = vpack.c.bf16 %v297_v32, %v296_v31  ;;  %v719_v36 = vpack.c.bf16 %v299_v35, %v298_v34  ;;  %v543_v37 = vld [vmem:[%s1149_s3] ss:$0 sm:$0xff]  ;;  %v300_v42 = vld [vmem:[#allocation10 + $0x70] sm:$0xff]  ;;  %v301_v43 = vld [vmem:[#allocation10 + $0x78] sm:$0xff] }
  0x76   :  { %694 = vmatprep.subr.bf16.mxu1 %v940_v1  ;;  %v722_v44 = vpack.c.bf16 %v301_v43, %v300_v42  ;;  %v380_v45 = vld [vmem:[#allocation11] sm:$0xff]  ;;  %v381_v46 = vld [vmem:[#allocation11 + $0x8] sm:$0xff]  ;;  %v382_v47 = vld [vmem:[#allocation11 + $0x10] sm:$0xff] }
  0x77   :  { %705 = vmatpush3.bf16.msra.mxu0 %v704_v21  ;;  %v725_v48 = vpack.c.bf16 %v381_v46, %v380_v45  ;;  %v383_v49 = vld [vmem:[#allocation11 + $0x18] sm:$0xff]  ;;  %v384_v51 = vld [vmem:[#allocation11 + $0x20] sm:$0xff]  ;;  %v385_v52 = vld [vmem:[#allocation11 + $0x28] sm:$0xff] }
  0x78   :  { %706 = vmatprep.subr.bf16.mxu0 %v940_v1  ;;  %v728_v50 = vpack.c.bf16 %v383_v49, %v382_v47  ;;  %v731_v53 = vpack.c.bf16 %v385_v52, %v384_v51  ;;  %v386_v54 = vld [vmem:[#allocation11 + $0x30] sm:$0xff]  ;;  %v387_v55 = vld [vmem:[#allocation11 + $0x38] sm:$0xff]  ;;  %v388_v57 = vld [vmem:[#allocation11 + $0x40] sm:$0xff] }
  0x79   :  { %696 = vmatpush3.bf16.msra.mxu1 %v695_v12  ;;  %v734_v56 = vpack.c.bf16 %v387_v55, %v386_v54  ;;  %v389_v58 = vld [vmem:[#allocation11 + $0x48] sm:$0xff]  ;;  %v390_v60 = vld [vmem:[#allocation11 + $0x50] sm:$0xff]  ;;  %v391_v61 = vld [vmem:[#allocation11 + $0x58] sm:$0xff] }
  0x7a   :  { %697 = vmatprep.subr.bf16.mxu1 %v940_v1  ;;  %v737_v59 = vpack.c.bf16 %v389_v58, %v388_v57  ;;  %v740_v62 = vpack.c.bf16 %v391_v61, %v390_v60  ;;  %v392_v63 = vld [vmem:[#allocation11 + $0x60] sm:$0xff]  ;;  %v545_v3 = vld [vmem:[%s1151_s5] ss:$0 sm:$0xff]  ;;  %v394_v8 = vld [vmem:[#allocation11 + $0x70] sm:$0xff] }
  0x7b   :  { %708 = vmatpush3.bf16.msra.mxu0 %v707_v24  ;;  %v395_v9 = vld [vmem:[#allocation11 + $0x78] sm:$0xff]  ;;  %v547_v11 = vld [vmem:[%s1153_s7] ss:$0 sm:$0xff]  ;;  %v487_v29 = vld [vmem:[#allocation5] sm:$0xff]  ;;  %s942_s7 = smov [#allocation13]  }
  0x7c   :  { %709 = vmatprep.subr.bf16.mxu0 %v940_v1  ;;  %v746_v10 = vpack.c.bf16 %v395_v9, %v394_v8  ;;  %v548_v17 = vld [vmem:[%s1155_s9] ss:$0 sm:$0xff]  ;;  %s531_s9 = sshll.u32 %s942_s7, 4  ;;  %s532_s9 = int_to_ptr.vmem [resolvable:$true] %s531_s9 }
  0x7d   :  { %699 = vmatpush3.bf16.msra.mxu1 %v698_v15  ;;  %v473_v15 = vlaneseq  ;;  %s898_s27 = scalar_lea.vmem %s532_s9, 128  ;;  %p903_p7 = scmp.lt.s32.totalorder %s532_s9, %s532_s9 }
  0x7e   :  { %724 = vmatprep.subr.bf16.mxu1 %v940_v1  ;;  %p899_p6 = scmp.ne.s32.totalorder %s532_s9, %s898_s27  ;;  %p904_p8 = scmp.lt.s32.totalorder %s898_s27, %s898_s27 }
  0x7f   :  { %711 = vmatpush3.bf16.msra.mxu0 %v710_v27  ;;  %v474_v16 = vand.u32 127, %v473_v15 }
  0x80   :  { %712 = vmatprep.subr.bf16.mxu0 %v940_v1  ;;  %p905_p9 = por %p904_p8, %p903_p7 }
  0x81   :  { %vm475_vm3 = vcmp.lt.s32.totalorder %v474_v16, 4  ;;  %vm517_vm6 = vcmp.eq.s32.totalorder %v474_v16, 1  ;;  %vm510_vm7 = vcmp.eq.s32.totalorder %v474_v16, 0  ;;  %vm520_vm8 = vcmp.eq.s32.totalorder %v474_v16, 2 }
  0x82   :  { %p906_p10 = pnand %p905_p9, %p899_p6 }
  0x83   :  { %714 = vmatpush3.bf16.msra.mxu0 %v713_v30 }
  0x84   :  { %715 = vmatprep.subr.bf16.mxu0 %v940_v1 }
  0x87   :  { %717 = vmatpush3.bf16.msra.mxu0 %v716_v33 }
  0x88   :  { %718 = vmatprep.subr.bf16.mxu0 %v940_v1 }
  0x8b   :  { %720 = vmatpush3.bf16.msra.mxu0 %v719_v36 }
  0x8c   :  { %721 = vmatprep.subr.bf16.mxu0 %v940_v1 }
  0x8f   :  { %723 = vmatpush3.bf16.msra.mxu0 %v722_v44 }
 0x143   :  { %v191_v38 = vpop.f32.mrb[0].mxu0 }
 0x144   :  { %v192_v39 = vadd.f32 %v543_v37, %v191_v38  ;;  %v598_v40 = vpop.f32.mrb[1].mxu0  ;;  %v941_v37 = vmov 4  }
 0x145   :  { %761 = vset.pattern.permute.xlu0 %v941_v37 }
 0x146   :  { %v195_v41 = vmax.f32 %v192_v39, 0.0 }
 0x148   :  { %616 = vmatmul.mubr.msk.f32.vlgmr.msra.gmra.mrb[0].mxu1 %vm211_vm2, %v195_v41 }
 0x149   :  { %685 = vmatprep.mubr.msk.f32.mxu1 %vm939_vm0, %v938_v0  ;;  %726 = vmatpush3.bf16.msra.mxu1 %v725_v48  ;;  %v393_v0 = vld [vmem:[#allocation11 + $0x68] sm:$0xff] }
 0x14a   :  { %727 = vmatprep.subr.bf16.mxu1 %v940_v1  ;;  %v743_v2 = vpack.c.bf16 %v393_v0, %v392_v63 }
 0x14d   :  { %729 = vmatpush3.bf16.msra.mxu1 %v728_v50 }
 0x14e   :  { %730 = vmatprep.subr.bf16.mxu1 %v940_v1 }
 0x151   :  { %732 = vmatpush3.bf16.msra.mxu1 %v731_v53 }
 0x152   :  { %733 = vmatprep.subr.bf16.mxu1 %v940_v1 }
 0x155   :  { %735 = vmatpush3.bf16.msra.mxu1 %v734_v56 }
 0x156   :  { %736 = vmatprep.subr.bf16.mxu1 %v940_v1 }
 0x159   :  { %738 = vmatpush3.bf16.msra.mxu1 %v737_v59 }
 0x15a   :  { %739 = vmatprep.subr.bf16.mxu1 %v940_v1 }
 0x15d   :  { %741 = vmatpush3.bf16.msra.mxu1 %v740_v62 }
 0x15e   :  { %742 = vmatprep.subr.bf16.mxu1 %v940_v1 }
 0x161   :  { %744 = vmatpush3.bf16.msra.mxu1 %v743_v2 }
 0x162   :  { %745 = vmatprep.subr.bf16.mxu1 %v940_v1 }
 0x165   :  { %747 = vmatpush3.bf16.msra.mxu1 %v746_v10 }
 0x21b   :  { %v281_v4 = vpop.f32.mrb[0].mxu1 }
 0x21c   :  { %v282_v5 = vadd.f32 %v545_v3, %v281_v4  ;;  %v617_v6 = vpop.f32.mrb[1].mxu1 }
 0x21e   :  { %v285_v7 = vmax.f32 %v282_v5, 0.0 }
 0x220   :  { %651 = vmatmul.mubr.f32.vlgmr.msra.gmra.mrb[2].mxu0 %v285_v7 }
 0x2f3   :  { %v375_v12 = vpop.f32.mrb[2].mxu0 }
 0x2f4   :  { %v376_v13 = vadd.f32 %v547_v11, %v375_v12  ;;  %v652_v1 = vpop.f32.mrb[3].mxu0 }
 0x2f6   :  { %v379_v14 = vmax.f32 %v376_v13, 0.0 }
 0x2f8   :  { %686 = vmatmul.mubr.f32.vlgmr.msra.gmra.mrb[2].mxu1 %v379_v14 }
 0x3cb   :  { %v469_v18 = vpop.f32.mrb[2].mxu1 }
 0x3cc   :  { %v470_v19 = vadd.f32 %v548_v17, %v469_v18  ;;  %v687_v20 = vpop.f32.mrb[3].mxu1 }
 0x3ce   :  { %v476_v21 = vsel %vm475_vm3, %v470_v19, -1e+30 }
 0x3cf   :  { %477 = vmax.xlane.f32.xlu0 %v476_v21 }
 0x45c   :  { %v478_v22 = vpop.xlane.xlu0 %477 }
 0x45d   :  { %v479_v23 = vsub.f32 %v476_v21, %v478_v22 }
 0x45f   :  { %v480_v24 = vmul.f32 1.442695, %v479_v23 }
 0x461   :  { %762 = vpow2.f32 %v480_v24 }
 0x46b   :  { %v763_v25 = vpop.eup %762 }
 0x46c   :  { %482 = vadd.xlane.f32.xlu0 %v763_v25 }
 0x4f9   :  { %v483_v26 = vpop.xlane.xlu0 %482 }
 0x4fa   :  { %764 = vlog2.f32 %v483_v26 }
 0x504   :  { %v765_v27 = vpop.eup %764 }
 0x505   :  { %v485_v28 = vmul.f32 0.6931472, %v765_v27 }
 0x507   :  { %v486_v30 = vsub.f32 %v479_v23, %v485_v28 }
 0x509   :  { %v488_v31 = vadd.f32 %v487_v29, %v486_v30 }
 0x50b   :  { %489 = vmax.xlane.f32.xlu1 %v488_v31 }
 0x598   :  { %v490_v32 = vpop.xlane.xlu1 %489 }
 0x599   :  { %vm491_vm4 = vcmp.ge.f32.partialorder %v488_v31, %v490_v32 }
 0x59a   :  { %v492_v33 = vsel %vm491_vm4, %v474_v16, 128  ;;  %v507_v36 = vsel %vm491_vm4, %v486_v30, -1e+30 }
 0x59b   :  { %v494_v34 = vshra.s32 %v492_v33, 16  ;;  %v493_v38 = vand.u32 65535, %v492_v33 }
 0x59d   :  { %v496_v35 = vcvt.s32.f32 %v494_v34  ;;  %v495_v40 = vcvt.s32.f32 %v493_v38 }
 0x59f   :  { %497 = vmin.xlane.f32.xlu1 %v496_v35 }
 0x5a3   :  { %508 = vmax.xlane.f32.xlu1 %v507_v36 }
 0x62c   :  { %v498_v39 = vpop.xlane.xlu1 %497 }
 0x62d   :  { %vm499_vm5 = vcmp.eq.f32.partialorder %v496_v35, %v498_v39  ;;  %v504_v42 = vcvt.f32.s32 %v498_v39 }
 0x62e   :  { %v500_v41 = vsel %vm499_vm5, %v495_v40, inf }
 0x62f   :  { %501 = vmin.xlane.f32.xlu0 %v500_v41  ;;  %v505_v44 = vshll.u32 %v504_v42, 16 }
 0x630   :  { %v509_v47 = vpop.xlane.xlu1 %508 }
 0x631   :  { %v518_v50 = vsel %vm517_vm6, %v509_v47, 0.0 }
 0x645   :  { %513 = vperm.xlu0 %761, %v470_v19  }
 0x6bc   :  { %v502_v43 = vpop.xlane.xlu0 %501 }
 0x6bd   :  { %v503_v45 = vcvt.f32.s32 %v502_v43 }
 0x6bf   :  { %v506_v46 = vadd.s32 %v505_v44, %v503_v45 }
 0x6c1   :  { %v521_v48 = vcvt.s32.f32 %v506_v46 }
 0x6c3   :  { %v522_v53 = vsel %vm520_vm8, %v521_v48, 0.0 }
 0x6c4   :  { %v514_v49 = vpop.permute.xlu0 %513 }
 0x6c5   :  { %v516_v51 = vsel %vm510_vm7, %v514_v49, 0.0 }
 0x6c6   :  { %v519_v52 = vadd.f32 %v518_v50, %v516_v51 }
 0x6c8   :  { %v523_v54 = vadd.f32 %v522_v53, %v519_v52 }
 0x6ca   :  { %524 = vst [vmem:[#allocation13] sm:$0xff] %v523_v54 }
 0x6cb   :  { %909 = shalt.err (!%p906_p10)
}
 0x6cc   :  { %s910_s4 = scalar_lea.hbm %s1156_s10, 128 }
 0x6cd   :  { %p911_p11 = scmp.ne.s32.totalorder %s1156_s10, %s910_s4  ;;  %p914_p12 = scmp.lt.u32.totalorder %s910_s4, %s1156_s10 }
 0x6cf   :  { %p916_p13 = pnand %p914_p12, %p911_p11 }
 0x6d1   :  { %919 = shalt.err (!%p916_p13)
}
 0x6d2   :  { %534 = dma.vmem_to_hbm [thread:$0]  %s532_s9, 128, %s1156_s10, [#allocation4]  }
 0x6d3   :  { %928 = dma.done.wait [#allocation4], 128  }
 0x6d4   :  { %929 = vsyncadd [#allocation4], 4294967168 }
 0x6d5   :  { %538 = vsyncpa [#allocation3], 1 }
 0x6d6   :  { %539 = vsyncpa [#allocation6], 1 }
 0x6d7   :  { %540 = vsyncpa [#allocation9], 1 }
 0x6d8   :  { %541 = vsyncpa [#allocation12], 1 }
 0x6d9   :  { %542 = vsyncpa [#allocation4], 1 }

</bundles_post_ra>
